<compile_context>
chip_gen: v7x
topology: tpu7x:2x2x1
jax: 0.10.0
libtpu: 0.0.40
codegen_flags: <defaults>
</compile_context>

<pallas_src>
import functools

import jax
import jax.numpy as jnp
from jax.experimental import pallas as pl
from jax.experimental.pallas import tpu as pltpu

LANE = 128      # vreg lane width
SUBLANE = 8     # vreg sublane count (f32)


def _round_up(x, m):
    return ((x + m - 1) // m) * m


def _vmem_capacity_bytes():
    """Per-TensorCore VMEM capacity; conservative 64 MiB (v7x) fallback."""
    try:
        return int(pltpu.get_tpu_info().vmem_capacity_bytes)
    except Exception:
        return 64 << 20


def simplenet_kernel(x_ref, w1_ref, b1_ref, w2_ref, b2_ref, w3_ref, b3_ref,
                     o_ref, *, compute_dtype):
    """One batch tile per grid step. Weights/biases have a constant block index,
    so Pallas keeps them resident in VMEM across grid iterations."""
    x = x_ref[...].astype(compute_dtype)                                 # (TB, D)

    # fc1 + ReLU  (MXU accumulates in f32; elementwise epilogue stays f32 -> v5e-safe)
    h1 = jnp.dot(x, w1_ref[...], preferred_element_type=jnp.float32)    # (TB, H_pad)
    h1 = jnp.maximum(h1 + b1_ref[...].astype(jnp.float32), 0.0)

    # fc2 + ReLU
    h2 = jnp.dot(h1.astype(compute_dtype), w2_ref[...],
                 preferred_element_type=jnp.float32)                     # (TB, H_pad)
    h2 = jnp.maximum(h2 + b2_ref[...].astype(jnp.float32), 0.0)

    # fc_end + Sigmoid — output columns are padded to a multiple of 128, so this is a
    # full, lane-dense (unmasked) store.
    logits = jnp.dot(h2.astype(compute_dtype), w3_ref[...],
                     preferred_element_type=jnp.float32)                 # (TB, C_pad)
    logits = logits + b3_ref[...].astype(jnp.float32)
    o_ref[...] = jax.nn.sigmoid(logits).astype(o_ref.dtype)


def simplenet_forward(x, w1, b1, w2, b2, w3, b3, *, batch_tile=None,
                      compute_dtype=jnp.bfloat16, out_dtype=jnp.float32,
                      x_pipeline_depth=2):
    """x: (B, input_size) float. Weights are (in, out); biases (1, out).

    compute_dtype: matmul/weight dtype (bf16 default — MXU-native on v5e/v6e/v7x,
    f32 accumulation is always preserved).  out_dtype: streamed output dtype.
    """
    B, D = x.shape
    H = w1.shape[1]
    C = w3.shape[1]

    # ---- Lane-dense hidden & output dims: zero-pad to multiples of 128.
    # Exact: padded fc1/fc2 columns have zero weight+bias -> relu(0)=0, and padded
    # fc2/fc_end rows are zero so they contribute nothing; extra classes are sliced off.
    H_pad = _round_up(H, LANE)
    C_pad = _round_up(C, LANE)
    if H_pad != H:
        w1 = jnp.pad(w1, ((0, 0), (0, H_pad - H)))
        b1 = jnp.pad(b1, ((0, 0), (0, H_pad - H)))
        w2 = jnp.pad(w2, ((0, H_pad - H), (0, H_pad - H)))
        b2 = jnp.pad(b2, ((0, 0), (0, H_pad - H)))
        w3 = jnp.pad(w3, ((0, H_pad - H), (0, 0)))
    if C_pad != C:
        w3 = jnp.pad(w3, ((0, 0), (0, C_pad - C)))
        b3 = jnp.pad(b3, ((0, 0), (0, C_pad - C)))

    # ---- bf16 (or other) weight cast: halves weight DMA bytes / resident VMEM.
    if compute_dtype != jnp.float32:
        w1 = w1.astype(compute_dtype)
        w2 = w2.astype(compute_dtype)
        w3 = w3.astype(compute_dtype)

    wbytes = jnp.dtype(compute_dtype).itemsize
    xbytes = jnp.dtype(x.dtype).itemsize
    obytes = jnp.dtype(out_dtype).itemsize

    weight_bytes = (D * H_pad + H_pad * H_pad + H_pad * C_pad) * wbytes
    bias_bytes = (2 * H_pad + C_pad) * b1.dtype.itemsize

    # ---- Generation-aware VMEM budget (per TensorCore).
    vmem_cap = _vmem_capacity_bytes()
    budget = int(0.75 * vmem_cap)

    # Bytes per batch row: pipelined x buffers + double-buffered out tile + f32
    # intermediates (h1, h2, logits).
    per_row = (x_pipeline_depth * D * xbytes
               + 2 * C_pad * obytes
               + (2 * H_pad + C_pad) * 4)

    # ---- Batch tile: fill it from the VMEM budget (conservatively assuming weights
    # could end up double-buffered), single grid step when the whole batch fits.
    if batch_tile is None:
        hard_cap = 2048 if vmem_cap >= (96 << 20) else 1024   # 128-MiB parts vs v7x
        avail = budget - 2 * (weight_bytes + bias_bytes)
        tb_cap = (max(avail // max(per_row, 1), SUBLANE) // SUBLANE) * SUBLANE
        tb_cap = max(SUBLANE, min(tb_cap, hard_cap))
        batch_tile = min(_round_up(B, SUBLANE), tb_cap)
    TB = max(SUBLANE, _round_up(batch_tile, SUBLANE))

    # Pad batch to a whole number of tiles; slice the result back afterwards.
    num_tiles = pl.cdiv(B, TB)
    B_pad = num_tiles * TB
    if B_pad != B:
        x = jnp.pad(x, ((0, B_pad - B), (0, 0)))

    kernel = functools.partial(simplenet_kernel, compute_dtype=compute_dtype)

    def build(single_buffer_weights):
        weight_buffers = 1 if single_buffer_weights else 2
        vmem_est = (weight_buffers * (weight_bytes + bias_bytes)
                    + x_pipeline_depth * TB * D * xbytes
                    + 2 * TB * C_pad * obytes
                    + TB * (2 * H_pad + C_pad) * 4)
        vmem_limit = int(min(max(int(1.5 * vmem_est), 8 << 20),
                             int(0.85 * vmem_cap)))

        def const_spec(shape):
            # Constant block index -> VMEM-resident across the whole grid; a single
            # buffer is enough (double-buffering constant blocks is pure waste).
            if single_buffer_weights:
                return pl.BlockSpec(shape, lambda i: (0,) * len(shape),
                                    pipeline_mode=pl.Buffered(1))
            return pl.BlockSpec(shape, lambda i: (0,) * len(shape))

        if x_pipeline_depth != 2:
            x_spec = pl.BlockSpec((TB, D), lambda i: (i, 0),
                                  pipeline_mode=pl.Buffered(x_pipeline_depth))
        else:
            x_spec = pl.BlockSpec((TB, D), lambda i: (i, 0))

        return pl.pallas_call(
            kernel,
            out_shape=jax.ShapeDtypeStruct((B_pad, C_pad), out_dtype),
            grid_spec=pl.GridSpec(
                grid=(num_tiles,),
                in_specs=[
                    x_spec,                    # x: batch-tiled, pipelined
                    const_spec(w1.shape),      # weights/biases: VMEM-resident
                    const_spec(b1.shape),
                    const_spec(w2.shape),
                    const_spec(b2.shape),
                    const_spec(w3.shape),
                    const_spec(b3.shape),
                ],
                out_specs=pl.BlockSpec((TB, C_pad), lambda i: (i, 0)),
            ),
            compiler_params=pltpu.CompilerParams(
                # Independent batch tiles -> megacore split on v7x (2 TCs);
                # measured-neutral on single-TC v5e/v6e.
                dimension_semantics=("parallel",),
                vmem_limit_bytes=vmem_limit,
            ),
        )

    args = (x, w1, b1, w2, b2, w3, b3)
    try:
        out = build(True)(*args)
    except Exception:
        # Fallback for JAX versions where Buffered(1) / pipeline_mode is unavailable.
        out = build(False)(*args)

    return out[:B, :C]


def init_params(key, input_size, hidden_size, num_classes):
    """Deterministic init mimicking nn.Linear's uniform(-1/sqrt(fan_in), 1/sqrt(fan_in)).
    Weights returned already transposed to (in, out)."""
    ks = jax.random.split(key, 6)

    def linear(kw, kb, fan_in, fan_out):
        bound = 1.0 / jnp.sqrt(fan_in)
        w = jax.random.uniform(kw, (fan_in, fan_out), jnp.float32, -bound, bound)
        b = jax.random.uniform(kb, (1, fan_out), jnp.float32, -bound, bound)
        return w, b

    w1, b1 = linear(ks[0], ks[1], input_size, hidden_size)
    w2, b2 = linear(ks[2], ks[3], hidden_size, hidden_size)
    w3, b3 = linear(ks[4], ks[5], hidden_size, num_classes)
    return w1, b1, w2, b2, w3, b3


if __name__ == "__main__":
    batch = 30            # not a tile multiple -> exercises batch pad/slice path
    input_size = 16
    hidden_size = 32      # not 128-aligned -> exercises H padding path
    num_classes = 1       # binary classifier head (sigmoid)

    key = jax.random.PRNGKey(0)
    kx, kp = jax.random.split(key)
    x = jax.random.normal(kx, (batch, input_size), jnp.float32)
    params = init_params(kp, input_size, hidden_size, num_classes)

    # Pure-JAX reference.
    w1, b1, w2, b2, w3, b3 = params
    h1 = jnp.maximum(x @ w1 + b1, 0.0)
    h2 = jnp.maximum(h1 @ w2 + b2, 0.0)
    ref = jax.nn.sigmoid(h2 @ w3 + b3)

    # f32 compute path (exact match), small tile so the grid has multiple steps
    # with VMEM-resident (single-buffered) weights.
    out_f32 = simplenet_forward(x, *params, batch_tile=8,
                                compute_dtype=jnp.float32)
    out_f32 = jax.block_until_ready(out_f32)
    assert out_f32.shape == (batch, num_classes)
    assert jnp.allclose(out_f32, ref, atol=1e-5, rtol=1e-5)

    # Default path: bf16 MXU matmuls (f32 accumulation) + auto batch tile
    # (whole batch in one grid step at these shapes).
    out_def = simplenet_forward(x, *params)
    out_def = jax.block_until_ready(out_def)
    assert out_def.shape == (batch, num_classes)
    assert jnp.allclose(out_def, ref, atol=2e-2, rtol=2e-2)

    print("KERNEL_OK")
</pallas_src>

<mosaic_0001>
module attributes {stable_mosaic.version = 11 : i64} {
  func.func @simplenet_kernel(%arg0: i32, %arg1: memref<8x16xf32, #tpu.memory_space<vmem>>, %arg2: memref<16x128xf32, #tpu.memory_space<vmem>>, %arg3: memref<1x128xf32, #tpu.memory_space<vmem>>, %arg4: memref<128x128xf32, #tpu.memory_space<vmem>>, %arg5: memref<1x128xf32, #tpu.memory_space<vmem>>, %arg6: memref<128x128xf32, #tpu.memory_space<vmem>>, %arg7: memref<1x128xf32, #tpu.memory_space<vmem>>, %arg8: memref<8x128xf32, #tpu.memory_space<vmem>>) attributes {dimension_semantics = [#tpu.dimension_semantics<parallel>], iteration_bounds = array<i64: 4>, scalar_prefetch = 0 : i64, scratch_operands = 0 : i64, tpu.core_type = #tpu.core_type<tc>, window_params = [{transform_indices = @transform_0, window_bounds = array<i64: 8, 16>}, {pipeline_mode = #tpu.pipeline_mode<synchronous>, transform_indices = @transform_1, window_bounds = array<i64: 16, 128>}, {pipeline_mode = #tpu.pipeline_mode<synchronous>, transform_indices = @transform_2, window_bounds = array<i64: 1, 128>}, {pipeline_mode = #tpu.pipeline_mode<synchronous>, transform_indices = @transform_3, window_bounds = array<i64: 128, 128>}, {pipeline_mode = #tpu.pipeline_mode<synchronous>, transform_indices = @transform_4, window_bounds = array<i64: 1, 128>}, {pipeline_mode = #tpu.pipeline_mode<synchronous>, transform_indices = @transform_5, window_bounds = array<i64: 128, 128>}, {pipeline_mode = #tpu.pipeline_mode<synchronous>, transform_indices = @transform_6, window_bounds = array<i64: 1, 128>}, {transform_indices = @transform_7, window_bounds = array<i64: 8, 128>}]} {
    %c0 = arith.constant 0 : index
    %c0_0 = arith.constant 0 : index
    %0 = vector.load %arg1[%c0, %c0_0] : memref<8x16xf32, #tpu.memory_space<vmem>>, vector<8x16xf32>
    %c0_1 = arith.constant 0 : index
    %c0_2 = arith.constant 0 : index
    %1 = vector.load %arg2[%c0_1, %c0_2] : memref<16x128xf32, #tpu.memory_space<vmem>>, vector<16x128xf32>
    %cst = arith.constant dense<0.000000e+00> : vector<8x128xf32>
    %2 = tpu.matmul %0, %1, %cst {dimension_numbers = #tpu.dot_dimension_numbers<[1], [0], [0], [1], [0, 0, 1, 1], [], []>} : vector<8x16xf32>, vector<16x128xf32>, vector<8x128xf32> -> vector<8x128xf32>
    %c0_3 = arith.constant 0 : index
    %c0_4 = arith.constant 0 : index
    %3 = vector.load %arg3[%c0_3, %c0_4] : memref<1x128xf32, #tpu.memory_space<vmem>>, vector<1x128xf32>
    %4 = vector.broadcast %3 : vector<1x128xf32> to vector<8x128xf32>
    %5 = arith.addf %2, %4 : vector<8x128xf32>
    %cst_5 = arith.constant 0.000000e+00 : f32
    %6 = vector.broadcast %cst_5 : f32 to vector<8x128xf32>
    %7 = arith.maximumf %5, %6 : vector<8x128xf32>
    %c0_6 = arith.constant 0 : index
    %c0_7 = arith.constant 0 : index
    %8 = vector.load %arg4[%c0_6, %c0_7] : memref<128x128xf32, #tpu.memory_space<vmem>>, vector<128x128xf32>
    %cst_8 = arith.constant dense<0.000000e+00> : vector<8x128xf32>
    %9 = tpu.matmul %7, %8, %cst_8 {dimension_numbers = #tpu.dot_dimension_numbers<[1], [0], [0], [1], [0, 0, 1, 1], [], []>} : vector<8x128xf32>, vector<128x128xf32>, vector<8x128xf32> -> vector<8x128xf32>
    %c0_9 = arith.constant 0 : index
    %c0_10 = arith.constant 0 : index
    %10 = vector.load %arg5[%c0_9, %c0_10] : memref<1x128xf32, #tpu.memory_space<vmem>>, vector<1x128xf32>
    %11 = vector.broadcast %10 : vector<1x128xf32> to vector<8x128xf32>
    %12 = arith.addf %9, %11 : vector<8x128xf32>
    %cst_11 = arith.constant 0.000000e+00 : f32
    %13 = vector.broadcast %cst_11 : f32 to vector<8x128xf32>
    %14 = arith.maximumf %12, %13 : vector<8x128xf32>
    %c0_12 = arith.constant 0 : index
    %c0_13 = arith.constant 0 : index
    %15 = vector.load %arg6[%c0_12, %c0_13] : memref<128x128xf32, #tpu.memory_space<vmem>>, vector<128x128xf32>
    %cst_14 = arith.constant dense<0.000000e+00> : vector<8x128xf32>
    %16 = tpu.matmul %14, %15, %cst_14 {dimension_numbers = #tpu.dot_dimension_numbers<[1], [0], [0], [1], [0, 0, 1, 1], [], []>} : vector<8x128xf32>, vector<128x128xf32>, vector<8x128xf32> -> vector<8x128xf32>
    %c0_15 = arith.constant 0 : index
    %c0_16 = arith.constant 0 : index
    %17 = vector.load %arg7[%c0_15, %c0_16] : memref<1x128xf32, #tpu.memory_space<vmem>>, vector<1x128xf32>
    %18 = vector.broadcast %17 : vector<1x128xf32> to vector<8x128xf32>
    %19 = arith.addf %16, %18 : vector<8x128xf32>
    %20 = arith.negf %19 : vector<8x128xf32>
    %21 = math.exp %20 : vector<8x128xf32>
    %cst_17 = arith.constant 1.000000e+00 : f32
    %22 = vector.broadcast %cst_17 : f32 to vector<8x128xf32>
    %23 = arith.addf %22, %21 : vector<8x128xf32>
    %24 = arith.divf %22, %23 : vector<8x128xf32>
    %c0_18 = arith.constant 0 : index
    %c0_19 = arith.constant 0 : index
    %25 = vector.load %arg8[%c0_18, %c0_19] : memref<8x128xf32, #tpu.memory_space<vmem>>, vector<8x128xf32>
    tpu.vector_store %arg8[%c0_18, %c0_19], %24 {strides = array<i32>} : memref<8x128xf32, #tpu.memory_space<vmem>>, vector<8x128xf32>,
    return
  }
  func.func @transform_0(%arg0: i32) -> (i32, i32) {
    %c0_i32 = arith.constant 0 : i32
    %c0_i32_0 = arith.constant 0 : i32
    return %arg0, %c0_i32 : i32, i32
  }
  func.func @transform_1(%arg0: i32) -> (i32, i32) {
    %c0_i32 = arith.constant 0 : i32
    %c0_i32_0 = arith.constant 0 : i32
    %c0_i32_1 = arith.constant 0 : i32
    return %c0_i32, %c0_i32_0 : i32, i32
  }
  func.func @transform_2(%arg0: i32) -> (i32, i32) {
    %c0_i32 = arith.constant 0 : i32
    %c0_i32_0 = arith.constant 0 : i32
    %c0_i32_1 = arith.constant 0 : i32
    return %c0_i32, %c0_i32_0 : i32, i32
  }
  func.func @transform_3(%arg0: i32) -> (i32, i32) {
    %c0_i32 = arith.constant 0 : i32
    %c0_i32_0 = arith.constant 0 : i32
    %c0_i32_1 = arith.constant 0 : i32
    return %c0_i32, %c0_i32_0 : i32, i32
  }
  func.func @transform_4(%arg0: i32) -> (i32, i32) {
    %c0_i32 = arith.constant 0 : i32
    %c0_i32_0 = arith.constant 0 : i32
    %c0_i32_1 = arith.constant 0 : i32
    return %c0_i32, %c0_i32_0 : i32, i32
  }
  func.func @transform_5(%arg0: i32) -> (i32, i32) {
    %c0_i32 = arith.constant 0 : i32
    %c0_i32_0 = arith.constant 0 : i32
    %c0_i32_1 = arith.constant 0 : i32
    return %c0_i32, %c0_i32_0 : i32, i32
  }
  func.func @transform_6(%arg0: i32) -> (i32, i32) {
    %c0_i32 = arith.constant 0 : i32
    %c0_i32_0 = arith.constant 0 : i32
    %c0_i32_1 = arith.constant 0 : i32
    return %c0_i32, %c0_i32_0 : i32, i32
  }
  func.func @transform_7(%arg0: i32) -> (i32, i32) {
    %c0_i32 = arith.constant 0 : i32
    %c0_i32_0 = arith.constant 0 : i32
    return %arg0, %c0_i32 : i32, i32
  }
}

module attributes {stable_mosaic.version = 11 : i64} {
  func.func @simplenet_kernel(%arg0: i32, %arg1: memref<8x16xf32, #tpu.memory_space<vmem>>, %arg2: memref<16x128xf32, #tpu.memory_space<vmem>>, %arg3: memref<1x128xf32, #tpu.memory_space<vmem>>, %arg4: memref<128x128xf32, #tpu.memory_space<vmem>>, %arg5: memref<1x128xf32, #tpu.memory_space<vmem>>, %arg6: memref<128x128xf32, #tpu.memory_space<vmem>>, %arg7: memref<1x128xf32, #tpu.memory_space<vmem>>, %arg8: memref<8x128xf32, #tpu.memory_space<vmem>>) attributes {dimension_semantics = [#tpu.dimension_semantics<parallel>], iteration_bounds = array<i64: 4>, scalar_prefetch = 0 : i64, scratch_operands = 0 : i64, tpu.core_type = #tpu.core_type<tc>, window_params = [{transform_indices = @transform_0, window_bounds = array<i64: 8, 16>}, {pipeline_mode = #tpu.pipeline_mode<synchronous>, transform_indices = @transform_1, window_bounds = array<i64: 16, 128>}, {pipeline_mode = #tpu.pipeline_mode<synchronous>, transform_indices = @transform_2, window_bounds = array<i64: 1, 128>}, {pipeline_mode = #tpu.pipeline_mode<synchronous>, transform_indices = @transform_3, window_bounds = array<i64: 128, 128>}, {pipeline_mode = #tpu.pipeline_mode<synchronous>, transform_indices = @transform_4, window_bounds = array<i64: 1, 128>}, {pipeline_mode = #tpu.pipeline_mode<synchronous>, transform_indices = @transform_5, window_bounds = array<i64: 128, 128>}, {pipeline_mode = #tpu.pipeline_mode<synchronous>, transform_indices = @transform_6, window_bounds = array<i64: 1, 128>}, {transform_indices = @transform_7, window_bounds = array<i64: 8, 128>}]} {
    %c0 = arith.constant 0 : index
    %c0_0 = arith.constant 0 : index
    %0 = vector.load %arg1[%c0, %c0_0] : memref<8x16xf32, #tpu.memory_space<vmem>>, vector<8x16xf32>
    %c0_1 = arith.constant 0 : index
    %c0_2 = arith.constant 0 : index
    %1 = vector.load %arg2[%c0_1, %c0_2] : memref<16x128xf32, #tpu.memory_space<vmem>>, vector<16x128xf32>
    %cst = arith.constant dense<0.000000e+00> : vector<8x128xf32>
    %2 = tpu.matmul %0, %1, %cst {dimension_numbers = #tpu.dot_dimension_numbers<[1], [0], [0], [1], [0, 0, 1, 1], [], []>} : vector<8x16xf32>, vector<16x128xf32>, vector<8x128xf32> -> vector<8x128xf32>
    %c0_3 = arith.constant 0 : index
    %c0_4 = arith.constant 0 : index
    %3 = vector.load %arg3[%c0_3, %c0_4] : memref<1x128xf32, #tpu.memory_space<vmem>>, vector<1x128xf32>
    %4 = vector.broadcast %3 : vector<1x128xf32> to vector<8x128xf32>
    %5 = arith.addf %2, %4 : vector<8x128xf32>
    %cst_5 = arith.constant 0.000000e+00 : f32
    %6 = vector.broadcast %cst_5 : f32 to vector<8x128xf32>
    %7 = arith.maximumf %5, %6 : vector<8x128xf32>
    %c0_6 = arith.constant 0 : index
    %c0_7 = arith.constant 0 : index
    %8 = vector.load %arg4[%c0_6, %c0_7] : memref<128x128xf32, #tpu.memory_space<vmem>>, vector<128x128xf32>
    %cst_8 = arith.constant dense<0.000000e+00> : vector<8x128xf32>
    %9 = tpu.matmul %7, %8, %cst_8 {dimension_numbers = #tpu.dot_dimension_numbers<[1], [0], [0], [1], [0, 0, 1, 1], [], []>} : vector<8x128xf32>, vector<128x128xf32>, vector<8x128xf32> -> vector<8x128xf32>
    %c0_9 = arith.constant 0 : index
    %c0_10 = arith.constant 0 : index
    %10 = vector.load %arg5[%c0_9, %c0_10] : memref<1x128xf32, #tpu.memory_space<vmem>>, vector<1x128xf32>
    %11 = vector.broadcast %10 : vector<1x128xf32> to vector<8x128xf32>
    %12 = arith.addf %9, %11 : vector<8x128xf32>
    %cst_11 = arith.constant 0.000000e+00 : f32
    %13 = vector.broadcast %cst_11 : f32 to vector<8x128xf32>
    %14 = arith.maximumf %12, %13 : vector<8x128xf32>
    %c0_12 = arith.constant 0 : index
    %c0_13 = arith.constant 0 : index
    %15 = vector.load %arg6[%c0_12, %c0_13] : memref<128x128xf32, #tpu.memory_space<vmem>>, vector<128x128xf32>
    %cst_14 = arith.constant dense<0.000000e+00> : vector<8x128xf32>
    %16 = tpu.matmul %14, %15, %cst_14 {dimension_numbers = #tpu.dot_dimension_numbers<[1], [0], [0], [1], [0, 0, 1, 1], [], []>} : vector<8x128xf32>, vector<128x128xf32>, vector<8x128xf32> -> vector<8x128xf32>
    %c0_15 = arith.constant 0 : index
    %c0_16 = arith.constant 0 : index
    %17 = vector.load %arg7[%c0_15, %c0_16] : memref<1x128xf32, #tpu.memory_space<vmem>>, vector<1x128xf32>
    %18 = vector.broadcast %17 : vector<1x128xf32> to vector<8x128xf32>
    %19 = arith.addf %16, %18 : vector<8x128xf32>
    %20 = arith.negf %19 : vector<8x128xf32>
    %21 = math.exp %20 : vector<8x128xf32>
    %cst_17 = arith.constant 1.000000e+00 : f32
    %22 = vector.broadcast %cst_17 : f32 to vector<8x128xf32>
    %23 = arith.addf %22, %21 : vector<8x128xf32>
    %24 = arith.divf %22, %23 : vector<8x128xf32>
    %c0_18 = arith.constant 0 : index
    %c0_19 = arith.constant 0 : index
    %25 = vector.load %arg8[%c0_18, %c0_19] : memref<8x128xf32, #tpu.memory_space<vmem>>, vector<8x128xf32>
    tpu.vector_store %arg8[%c0_18, %c0_19], %24 {strides = array<i32>} : memref<8x128xf32, #tpu.memory_space<vmem>>, vector<8x128xf32>,
    return
  }
  func.func @transform_0(%arg0: i32) -> (i32, i32) {
    %c0_i32 = arith.constant 0 : i32
    %c0_i32_0 = arith.constant 0 : i32
    return %arg0, %c0_i32 : i32, i32
  }
  func.func @transform_1(%arg0: i32) -> (i32, i32) {
    %c0_i32 = arith.constant 0 : i32
    %c0_i32_0 = arith.constant 0 : i32
    %c0_i32_1 = arith.constant 0 : i32
    return %c0_i32, %c0_i32_0 : i32, i32
  }
  func.func @transform_2(%arg0: i32) -> (i32, i32) {
    %c0_i32 = arith.constant 0 : i32
    %c0_i32_0 = arith.constant 0 : i32
    %c0_i32_1 = arith.constant 0 : i32
    return %c0_i32, %c0_i32_0 : i32, i32
  }
  func.func @transform_3(%arg0: i32) -> (i32, i32) {
    %c0_i32 = arith.constant 0 : i32
    %c0_i32_0 = arith.constant 0 : i32
    %c0_i32_1 = arith.constant 0 : i32
    return %c0_i32, %c0_i32_0 : i32, i32
  }
  func.func @transform_4(%arg0: i32) -> (i32, i32) {
    %c0_i32 = arith.constant 0 : i32
    %c0_i32_0 = arith.constant 0 : i32
    %c0_i32_1 = arith.constant 0 : i32
    return %c0_i32, %c0_i32_0 : i32, i32
  }
  func.func @transform_5(%arg0: i32) -> (i32, i32) {
    %c0_i32 = arith.constant 0 : i32
    %c0_i32_0 = arith.constant 0 : i32
    %c0_i32_1 = arith.constant 0 : i32
    return %c0_i32, %c0_i32_0 : i32, i32
  }
  func.func @transform_6(%arg0: i32) -> (i32, i32) {
    %c0_i32 = arith.constant 0 : i32
    %c0_i32_0 = arith.constant 0 : i32
    %c0_i32_1 = arith.constant 0 : i32
    return %c0_i32, %c0_i32_0 : i32, i32
  }
  func.func @transform_7(%arg0: i32) -> (i32, i32) {
    %c0_i32 = arith.constant 0 : i32
    %c0_i32_0 = arith.constant 0 : i32
    return %arg0, %c0_i32 : i32, i32
  }
}

</mosaic_0001>

<bundles_post_ra>
// kernel: tpu_custom_call.1
= control target key start
LH: loop header
LB: loop body
LE: loop exit
PB: predicated region body
PF: predicated region fallthrough
CT: control target
= control target key end

     0   :  { %12 = vsyncpa [#allocation3], 0  ;;  %s1314_s0 = inlined_call_operand.vmem [shape: f32[32,16], index: 0, kind: input, shape index: {}]   ;;  %s1315_s1 = inlined_call_operand.vmem [shape: f32[16,128], index: 1, kind: input, shape index: {}]   ;;  %s1316_s2 = inlined_call_operand.vmem [shape: f32[1,128], index: 2, kind: input, shape index: {}]   ;;  %s1317_s3 = inlined_call_operand.hbm [shape: f32[128,128], index: 3, kind: input, shape index: {}]   ;;  %s1318_s4 = inlined_call_operand.vmem [shape: f32[1,128], index: 4, kind: input, shape index: {}]   ;;  %s1319_s5 = inlined_call_operand.hbm [shape: f32[128,128], index: 5, kind: input, shape index: {}]   ;;  %s1320_s6 = inlined_call_operand.vmem [shape: f32[1,128], index: 6, kind: input, shape index: {}]   ;;  %s1321_s7 = inlined_call_operand.hbm [shape: f32[32,128], index: 7, kind: output, shape index: {}]  }
   0x1   :  { %13 = vsyncpa [#allocation6], 0 }
   0x2   :  { %14 = vsyncpa [#allocation4], 0 }
   0x3   :  { %16 = vsyncpa [#allocation4 + $0x1], 0  ;;  %s1107_s24 = smov 0   ;;  %s1109_s25 = smov 0  }
   0x4   :  { %s1111_s26 = smov 0   ;;  %s1113_s27 = smov 0  }
   0x5 LB: > { %s1128_s28 = sadd.s32 4294967295, %s1057_s27   ;;  %s678_s29 = sadd.s32 4294967294, %s1057_s27   ;;  %s1057_s27 = sphi %s1113_s27, %s1341_s27   ;;  %s1053_s26 = sphi %s1111_s26, %s1340_s26   ;;  %s1049_s25 = sphi %s1109_s25, %s1339_s25   ;;  %s1045_s24 = sphi %s1107_s24, %s1338_s24  }
   0x6   : > { %s1132_s30 = sadd.s32 1, %s1057_s27   ;;  %s181_s8 = sadd.s32 1, %s1053_s26 }
   0x7   : > { %s178_s9 = ssub.s32 %s1057_s27, %s1132_s30  ;;  %p191_p0 = scmp.ne.s32.totalorder %s1053_s26, %s1049_s25 }
   0x8   : > { %p179_p1 = scmp.eq.s32.totalorder %s178_s9, 0  ;;  %p192_p2 = scmp.eq.s32.totalorder %s1128_s28, 3 }
   0x9   : > { %p197_p3 = scmp.ne.s32.totalorder %s1049_s25, %s1045_s24  ;;  %p198_p4 = scmp.eq.s32.totalorder %s678_s29, 3 }
   0xa   : > { %s1143_s10 = scalar_select %p179_p1, %s1053_s26, %s181_s8  }
   0xb   : > { %p1145_p5 = por %p192_p2, %p191_p0  ;;  %p1149_p6 = por %p198_p4, %p197_p3 }
   0xc   : > { %1325 = sst [smem:[#allocation11_spill]] %s1143_s10  ;;  %p679_p7 = scmp.ge.s32.totalorder %s1057_s27, 1 }
   0xd   : > { %s1326_s11 = scalar_select %p1145_p5, 1, 0 }
   0xe   : > { %s1327_s12 = scalar_select %p1149_p6, 1, 0 }
   0xf   : > { %p205_p8 = scmp.lt.s32.totalorder %s1057_s27, 5  ;;  %p1322_p9 = scmp.eq.s32.totalorder %s1128_s28, 0 }
  0x10   : > { %s1059_s14 = smov [#allocation2]   ;;  %s1060_s17 = smov [#allocation5]  }
  0x11   : > { %p1156_p10 = pnand %p679_p7, %p205_p8  ;;  %s223_s15 = sshll.u32 %s1059_s14, 4  ;;  %s224_s15 = int_to_ptr.vmem [resolvable:$true] %s223_s15 }
  0x12   : > { %s239_s18 = sshll.u32 %s1060_s17, 4  ;;  %s931_s21 = scalar_lea.hbm %s1317_s3, 2048  ;;  %s1168_s18 = int_to_ptr.vmem [resolvable:$true] %s239_s18 }
  0x13   : > { %s1328_s13 = scalar_select %p1156_p10, 1, 0 }
  0x14   : > { %p872_p11 = pneg %p1156_p10  ;;  %p932_p13 = scmp.ne.s32.totalorder %s1317_s3, %s931_s21 }
  0x15   : > { %p938_p3 = scmp.lt.u32.totalorder %s931_s21, %s1317_s3 }
  0x16   : > { %p1164_p12 = pnand %p1322_p9, %p872_p11 }
  0x18   : > { %p933_p0 = pneg %p1164_p12 }
  0x1a   : > { %p934_p1 = pnand %p933_p0, %p932_p13 }
  0x1c   : > { %p935_p2 = pneg %p934_p1 }
  0x1e   : > { %p940_p4 = pnand %p938_p3, %p935_p2 }
  0x20   : > { %943 = shalt.err (!%p940_p4)
}
  0x21   : > { %s944_s9 = scalar_lea.vmem %s224_s15, 2048  ;;  %p952_p9 = scmp.lt.s32.totalorder %s224_s15, %s224_s15 }
  0x22   : > { %p945_p7 = scmp.ne.s32.totalorder %s224_s15, %s944_s9  ;;  %p953_p6 = scmp.lt.s32.totalorder %s944_s9, %s944_s9 }
  0x24   : > { %p947_p8 = pnand %p945_p7, %p933_p0  ;;  %p954_p5 = por %p953_p6, %p952_p9 }
  0x26   : > { %p948_p11 = pneg %p947_p8 }
  0x28   : > { %p955_p10 = pnand %p954_p5, %p948_p11 }
  0x2a   : > { %958 = shalt.err (!%p955_p10)
}
  0x2b   : > { %s1061_s14 = smov 128   ;;  %s1062_s17 = smov 8  }
  0x2c   : > { %875 = dma.hbm_to_vmem [thread:$0]  (!%p1164_p12), %s1317_s3, 2048, %s224_s15, [#allocation3], %s1061_s14, %s1061_s14, %s1062_s17  }
  0x2d   : > { %s959_s23 = scalar_lea.hbm %s1319_s5, 2048 }
  0x2e   : > { %p960_p13 = scmp.ne.s32.totalorder %s1319_s5, %s959_s23  ;;  %p966_p9 = scmp.lt.u32.totalorder %s959_s23, %s1319_s5 }
  0x30   : > { %p962_p5 = pnand %p960_p13, %p933_p0 }
  0x32   : > { %p963_p6 = pneg %p962_p5 }
  0x34   : > { %p968_p10 = pnand %p966_p9, %p963_p6 }
  0x36   : > { %971 = shalt.err (!%p968_p10)
}
  0x37   : > { %s972_s15 = scalar_lea.vmem %s1168_s18, 2048  ;;  %p980_p4 = scmp.lt.s32.totalorder %s1168_s18, %s1168_s18 }
  0x38   : > { %p973_p1 = scmp.ne.s32.totalorder %s1168_s18, %s972_s15  ;;  %p981_p7 = scmp.lt.s32.totalorder %s972_s15, %s972_s15 }
  0x3a   : > { %p975_p2 = pnand %p973_p1, %p933_p0  ;;  %p982_p8 = por %p981_p7, %p980_p4 }
  0x3c   : > { %p976_p3 = pneg %p975_p2 }
  0x3e   : > { %p983_p11 = pnand %p982_p8, %p976_p3 }
  0x40   : > { %986 = shalt.err (!%p983_p11)
}
  0x41   : > { %878 = dma.hbm_to_vmem [thread:$0]  (!%p1164_p12), %s1319_s5, 2048, %s1168_s18, [#allocation6], %s1061_s14, %s1061_s14, %s1062_s17  }
  0x42   : > { %p1330_p13 = scmp.ne.s32.totalorder %s1328_s13, 0 }
  0x43   : > { %p1331_p5 = scmp.eq.s32.totalorder (!%p1330_p13), %s1128_s28, 0 }
  0x44   : > { %265 = sbr.rel (%p1330_p13) target bundleno = 773 (0x305), region = 48 }
  0x4b   : > { %1032 = dma.done.wait (%p1331_p5), [#allocation3], 2048   ;;  %p1332_p0 = pmov %p1331_p5 }
  0x4d   : > { %1034 = vsyncadd (%p1332_p0), [#allocation3], 4294965248  ;;  %p1333_p6 = pmov %p1332_p0 }
  0x4e   : > { %p1334_p9 = pmov %p1332_p0 }
  0x4f   : > { %1036 = dma.done.wait (%p1333_p6), [#allocation6], 2048  }
  0x50   : > { %1038 = vsyncadd (%p1334_p9), [#allocation6], 4294965248  ;;  %p300_p10 = scmp.lt.s32.totalorder %s1128_s28, 3  ;;  %v1063_v0 = vmov 0.0|0.0   ;;  %vm1064_vm0 = vmmov 0   ;;  %v1065_v1 = vmov 0.0  }
  0x51   : > { %811 = vmatprep.subr.bf16.mxu0 %v1063_v0  ;;  %738 = vmatprep.mubr.msk.f32.mxu0 %vm1064_vm0, %v1065_v1  ;;  %v305_v2 = vld [vmem:[%s1315_s1] sm:$0xff]  ;;  %v306_v3 = vld [vmem:[%s1315_s1 + $0x8] sm:$0xff]  ;;  %v391_v7 = vld [vmem:[#allocation2 + $0x10] sm:$0xff]  ;;  %vm314_vm1 = vcmask 130048   ;;  %s694_s18 = sshll.u32 %s1128_s28, 7  ;;  %p1335_p1 = scmp.ne.s32.totalorder %s1326_s11, 0 }
  0x52   : > { %s301_s13 = scalar_select %p300_p10, %s1128_s28, 3  ;;  %814 = vmatprep.subr.bf16.mxu1 %v1063_v0  ;;  %773 = vmatprep.mubr.msk.f32.mxu1 %vm1064_vm0, %v1065_v1  ;;  %v812_v4 = vpack.c.bf16 %v306_v3, %v305_v2  ;;  %v389_v5 = vld [vmem:[#allocation2] sm:$0xff]  ;;  %v390_v6 = vld [vmem:[#allocation2 + $0x8] sm:$0xff]  ;;  %v392_v9 = vld [vmem:[#allocation2 + $0x18] sm:$0xff] }
  0x53   : > { %v815_v8 = vpack.c.bf16 %v390_v6, %v389_v5  ;;  %v818_v11 = vpack.c.bf16 %v392_v9, %v391_v7  ;;  %v393_v12 = vld [vmem:[#allocation2 + $0x20] sm:$0xff]  ;;  %v394_v13 = vld [vmem:[#allocation2 + $0x28] sm:$0xff]  ;;  %v395_v15 = vld [vmem:[#allocation2 + $0x30] sm:$0xff]  ;;  %s1272_s22 = scalar_lea.hbm %s1321_s7, %s694_s18  ;;  %s1066_s28 = smov [#allocation7]  }
  0x54   : > { %s687_s16 = sshll.u32 %s301_s13, 3  ;;  %813 = vmatpush3.bf16.msra.mxu0 %v812_v4  ;;  %v821_v14 = vpack.c.bf16 %v394_v13, %v393_v12  ;;  %v396_v16 = vld [vmem:[#allocation2 + $0x38] sm:$0xff]  ;;  %v397_v18 = vld [vmem:[#allocation2 + $0x40] sm:$0xff]  ;;  %v398_v19 = vld [vmem:[#allocation2 + $0x48] sm:$0xff]  ;;  %s297_s13 = sand.u32 1, %s1049_s25  }
  0x55   : > { %s303_s23 = scalar_lea.vmem %s1314_s0, %s687_s16  ;;  %816 = vmatpush3.bf16.msra.mxu1 %v815_v8  ;;  %838 = vmatprep.subr.bf16.mxu0 %v1063_v0  ;;  %v824_v17 = vpack.c.bf16 %v396_v16, %v395_v15  ;;  %v827_v20 = vpack.c.bf16 %v398_v19, %v397_v18  ;;  %v399_v21 = vld [vmem:[#allocation2 + $0x50] sm:$0xff]  ;;  %v400_v22 = vld [vmem:[#allocation2 + $0x58] sm:$0xff]  ;;  %v401_v24 = vld [vmem:[#allocation2 + $0x60] sm:$0xff]  ;;  %s686_s16 = sshll.u32 %s297_s13, 3 }
  0x56   : > { %v304_v10 = vld [vmem:[%s303_s23] sm:$0xff]  ;;  %817 = vmatprep.subr.bf16.mxu1 %v1063_v0  ;;  %v830_v23 = vpack.c.bf16 %v400_v22, %v399_v21  ;;  %v402_v25 = vld [vmem:[#allocation2 + $0x68] sm:$0xff]  ;;  %v403_v27 = vld [vmem:[#allocation2 + $0x70] sm:$0xff]  ;;  %s299_s14 = scalar_lea.vmem [#allocation7], %s686_s16  ;;  %s584_s23 = scalar_lea.sflag [#allocation4], %s297_s13 }
  0x57   : > { %739 = vmatmul.mubr.msk.f32.vlgmr.msra.gmra.mrb[0].mxu0 %vm314_vm1, %v304_v10  ;;  %v833_v26 = vpack.c.bf16 %v402_v25, %v401_v24  ;;  %v404_v28 = vld [vmem:[#allocation2 + $0x78] sm:$0xff]  ;;  %v483_v30 = vld [vmem:[#allocation5] sm:$0xff]  ;;  %v484_v31 = vld [vmem:[#allocation5 + $0x8] sm:$0xff]  ;;  %s597_s17 = sshll.u32 %s299_s14, 4  ;;  %s991_s8 = sshll.u32 %s1066_s28, 4  ;;  %s1274_s17 = int_to_ptr.vmem [resolvable:$true] %s597_s17  ;;  %s992_s8 = int_to_ptr.vmem [resolvable:$false] %s991_s8 }
  0x58   : > { %808 = vmatprep.mubr.msk.f32.mxu0 %vm1064_vm0, %v1065_v1  ;;  %v836_v29 = vpack.c.bf16 %v404_v28, %v403_v27  ;;  %v485_v32 = vld [vmem:[#allocation5 + $0x10] sm:$0xff]  ;;  %v839_v33 = vpack.c.bf16 %v484_v31, %v483_v30  ;;  %v486_v34 = vld [vmem:[#allocation5 + $0x18] sm:$0xff]  ;;  %v487_v36 = vld [vmem:[#allocation5 + $0x20] sm:$0xff]  ;;  %s987_s29 = scalar_lea.vmem %s1274_s17, 128  ;;  %s993_s9 = scalar_lea.vmem %s992_s8, 256 }
  0x59   : > { %819 = vmatpush3.bf16.msra.mxu1 %v818_v11  ;;  %v842_v35 = vpack.c.bf16 %v486_v34, %v485_v32  ;;  %v488_v37 = vld [vmem:[#allocation5 + $0x28] sm:$0xff]  ;;  %v489_v39 = vld [vmem:[#allocation5 + $0x30] sm:$0xff]  ;;  %v490_v40 = vld [vmem:[#allocation5 + $0x38] sm:$0xff]  ;;  %p988_p12 = scmp.ne.s32.totalorder %s1274_s17, %s987_s29  ;;  %p994_p4 = scmp.lt.s32.totalorder %s1274_s17, %s992_s8 }
  0x5a   : > { %820 = vmatprep.subr.bf16.mxu1 %v1063_v0  ;;  %840 = vmatpush3.bf16.msra.mxu0 %v839_v33  ;;  %v845_v38 = vpack.c.bf16 %v488_v37, %v487_v36  ;;  %v848_v41 = vpack.c.bf16 %v490_v40, %v489_v39  ;;  %v491_v42 = vld [vmem:[#allocation5 + $0x40] sm:$0xff]  ;;  %v492_v43 = vld [vmem:[#allocation5 + $0x48] sm:$0xff]  ;;  %v493_v45 = vld [vmem:[#allocation5 + $0x50] sm:$0xff]  ;;  %p995_p7 = scmp.lt.s32.totalorder %s993_s9, %s987_s29 }
  0x5b   : > { %841 = vmatprep.subr.bf16.mxu0 %v1063_v0  ;;  %v851_v44 = vpack.c.bf16 %v492_v43, %v491_v42  ;;  %v494_v46 = vld [vmem:[#allocation5 + $0x58] sm:$0xff]  ;;  %v495_v48 = vld [vmem:[#allocation5 + $0x60] sm:$0xff]  ;;  %v496_v49 = vld [vmem:[#allocation5 + $0x68] sm:$0xff]  ;;  %p989_p2 = pnand %p988_p12, %p1335_p1 }
  0x5c   : > { %v854_v47 = vpack.c.bf16 %v494_v46, %v493_v45  ;;  %v857_v50 = vpack.c.bf16 %v496_v49, %v495_v48  ;;  %v688_v51 = vld [vmem:[%s1316_s2] ss:$0 sm:$0xff]  ;;  %v497_v56 = vld [vmem:[#allocation5 + $0x70] sm:$0xff]  ;;  %v498_v57 = vld [vmem:[#allocation5 + $0x78] sm:$0xff]  ;;  %p996_p8 = por %p995_p7, %p994_p4 }
  0x5d   : > { %822 = vmatpush3.bf16.msra.mxu1 %v821_v14  ;;  %v860_v58 = vpack.c.bf16 %v498_v57, %v497_v56  ;;  %v690_v59 = vld [vmem:[%s1318_s4] ss:$0 sm:$0xff]  ;;  %p990_p3 = pneg %p989_p2 }
  0x5e   : > { %823 = vmatprep.subr.bf16.mxu1 %v1063_v0  ;;  %843 = vmatpush3.bf16.msra.mxu0 %v842_v35 }
  0x5f   : > { %844 = vmatprep.subr.bf16.mxu0 %v1063_v0  ;;  %p997_p11 = pnand %p996_p8, %p990_p3 }
  0x61   : > { %825 = vmatpush3.bf16.msra.mxu1 %v824_v17 }
  0x62   : > { %826 = vmatprep.subr.bf16.mxu1 %v1063_v0  ;;  %846 = vmatpush3.bf16.msra.mxu0 %v845_v38 }
  0x63   : > { %847 = vmatprep.subr.bf16.mxu0 %v1063_v0 }
  0x65   : > { %828 = vmatpush3.bf16.msra.mxu1 %v827_v20 }
  0x66   : > { %829 = vmatprep.subr.bf16.mxu1 %v1063_v0  ;;  %849 = vmatpush3.bf16.msra.mxu0 %v848_v41 }
  0x67   : > { %850 = vmatprep.subr.bf16.mxu0 %v1063_v0 }
  0x69   : > { %831 = vmatpush3.bf16.msra.mxu1 %v830_v23 }
  0x6a   : > { %832 = vmatprep.subr.bf16.mxu1 %v1063_v0  ;;  %852 = vmatpush3.bf16.msra.mxu0 %v851_v44 }
  0x6b   : > { %853 = vmatprep.subr.bf16.mxu0 %v1063_v0 }
  0x6d   : > { %834 = vmatpush3.bf16.msra.mxu1 %v833_v26 }
  0x6e   : > { %835 = vmatprep.subr.bf16.mxu1 %v1063_v0  ;;  %855 = vmatpush3.bf16.msra.mxu0 %v854_v47 }
  0x6f   : > { %856 = vmatprep.subr.bf16.mxu0 %v1063_v0 }
  0x71   : > { %837 = vmatpush3.bf16.msra.mxu1 %v836_v29 }
  0x72   : > { %858 = vmatpush3.bf16.msra.mxu0 %v857_v50 }
  0x73   : > { %859 = vmatprep.subr.bf16.mxu0 %v1063_v0  ;;  %v691_v0 = vld [vmem:[%s1320_s6] ss:$0 sm:$0xff] }
  0x76   : > { %861 = vmatpush3.bf16.msra.mxu0 %v860_v58 }
 0x12a   : > { %v384_v52 = vpop.f32.mrb[0].mxu0 }
 0x12b   : > { %v385_v53 = vadd.f32 %v688_v51, %v384_v52  ;;  %v740_v54 = vpop.f32.mrb[1].mxu0 }
 0x12d   : > { %v388_v55 = vmax.f32 %v385_v53, 0.0 }
 0x12f   : > { %774 = vmatmul.mubr.f32.vlgmr.msra.gmra.mrb[0].mxu1 %v388_v55 }
 0x202   : > { %v478_v60 = vpop.f32.mrb[0].mxu1 }
 0x203   : > { %v479_v61 = vadd.f32 %v690_v59, %v478_v60  ;;  %v775_v62 = vpop.f32.mrb[1].mxu1 }
 0x205   : > { %v482_v63 = vmax.f32 %v479_v61, 0.0 }
 0x207   : > { %809 = vmatmul.mubr.f32.vlgmr.msra.gmra.mrb[2].mxu0 %v482_v63 }
 0x2da   : > { %v572_v1 = vpop.f32.mrb[2].mxu0 }
 0x2db   : > { %v573_v2 = vadd.f32 %v691_v0, %v572_v1  ;;  %v810_v3 = vpop.f32.mrb[3].mxu0 }
 0x2dd   : > { %v692_v4 = vmul.f32 -1.442695, %v573_v2 }
 0x2df   : > { %927 = vpow2.f32 %v692_v4 }
 0x2e9   : > { %v928_v5 = vpop.eup %927 }
 0x2ea   : > { %v579_v6 = vadd.f32 1.0, %v928_v5 }
 0x2ec   : > { %929 = vrcp.f32 %v579_v6 }
 0x2f6   : > { %v930_v7 = vpop.eup %929 }
 0x2f7   : > { %582 = vst [vmem:[%s299_s14] sm:$0xff] %v930_v7 }
 0x2f8   : > { %1000 = shalt.err (!%p997_p11)
}
 0x2f9   : > { %s1001_s15 = scalar_lea.hbm %s1272_s22, 128  ;;  %s1005_s13 = scalar_lea.hbm %s1321_s7, 512 }
 0x2fa   : > { %p1002_p13 = scmp.ne.s32.totalorder %s1272_s22, %s1001_s15  ;;  %p1006_p6 = scmp.lt.u32.totalorder %s1272_s22, %s1321_s7 }
 0x2fb   : > { %p1007_p9 = scmp.lt.u32.totalorder %s1005_s13, %s1001_s15  ;;  %p1009_p12 = scmp.lt.u32.totalorder %s1001_s15, %s1272_s22 }
 0x2fc   : > { %p1003_p5 = pnand %p1002_p13, %p1335_p1 }
 0x2fd   : > { %p1008_p10 = por %p1007_p9, %p1006_p6 }
 0x2fe   : > { %p1004_p0 = pneg %p1003_p5 }
 0x2ff   : > { %p1010_p2 = por %p1009_p12, %p1008_p10 }
 0x301   : > { %p1011_p3 = pnand %p1010_p2, %p1004_p0 }
 0x303   : > { %1014 = shalt.err (!%p1011_p3)
}
 0x304   : > { %870 = dma.vmem_to_hbm [thread:$0]  (%p1335_p1), %s1274_s17, 128, %s1272_s22, %s584_s23  }
 0x305 PF: > { %p887_p4 = scmp.ge.s32.totalorder %s1057_s27, 2  ;;  %s609_s14 = sand.u32 1, %s1045_s24  }
 0x306   : > { %p1336_p7 = scmp.ne.s32.totalorder %s1327_s12, 0  ;;  %s610_s20 = scalar_lea.sflag [#allocation4], %s609_s14 }
 0x308   : > { %p880_p8 = pnand %p887_p4, %p1336_p7 }
 0x30a   : > { %1040 = dma.done.wait (!%p880_p8), %s610_s20, 128  }
 0x30b   : > { %1042 = vsyncadd (!%p880_p8), %s610_s20, 4294967168  ;;  %s1337_s21 = sld [smem:[#allocation11_spill]]  ;;  %p19_p11 = scmp.ge.s32.totalorder %s1132_s30, 6  }
 0x30c   : > { %s1338_s24 = smov %s1049_s25  ;;  %s1339_s25 = smov %s1053_s26 }
 0x30d   : > { %s1341_s27 = smov %s1132_s30  ;;  %21 = sbr.rel (!%p19_p11) target bundleno = 5 (0x5), region = 92 }
 0x311   : > { %s1340_s26 = smov %s1337_s21 }
 0x314   :  { %615 = vsyncpa [#allocation3], 1 }
 0x315   :  { %617 = vsyncpa [#allocation3 + $0x1], 1 }
 0x316   :  { %618 = vsyncpa [#allocation6], 1 }
 0x317   :  { %619 = vsyncpa [#allocation4], 1 }
 0x318   :  { %621 = vsyncpa [#allocation4 + $0x1], 1 }

// kernel: tpu_custom_call.1
= control target key start
LH: loop header
LB: loop body
LE: loop exit
PB: predicated region body
PF: predicated region fallthrough
CT: control target
= control target key end

     0   :  { %12 = vsyncpa [#allocation3], 0  ;;  %s1314_s0 = inlined_call_operand.vmem [shape: f32[32,16], index: 0, kind: input, shape index: {}]   ;;  %s1315_s1 = inlined_call_operand.vmem [shape: f32[16,128], index: 1, kind: input, shape index: {}]   ;;  %s1316_s2 = inlined_call_operand.vmem [shape: f32[1,128], index: 2, kind: input, shape index: {}]   ;;  %s1317_s3 = inlined_call_operand.hbm [shape: f32[128,128], index: 3, kind: input, shape index: {}]   ;;  %s1318_s4 = inlined_call_operand.vmem [shape: f32[1,128], index: 4, kind: input, shape index: {}]   ;;  %s1319_s5 = inlined_call_operand.hbm [shape: f32[128,128], index: 5, kind: input, shape index: {}]   ;;  %s1320_s6 = inlined_call_operand.vmem [shape: f32[1,128], index: 6, kind: input, shape index: {}]   ;;  %s1321_s7 = inlined_call_operand.hbm [shape: f32[32,128], index: 7, kind: output, shape index: {}]  }
   0x1   :  { %13 = vsyncpa [#allocation6], 0 }
   0x2   :  { %14 = vsyncpa [#allocation4], 0 }
   0x3   :  { %16 = vsyncpa [#allocation4 + $0x1], 0  ;;  %s1107_s24 = smov 0   ;;  %s1109_s25 = smov 0  }
   0x4   :  { %s1111_s26 = smov 0   ;;  %s1113_s27 = smov 0  }
   0x5 LB: > { %s1128_s28 = sadd.s32 4294967295, %s1057_s27   ;;  %s678_s29 = sadd.s32 4294967294, %s1057_s27   ;;  %s1057_s27 = sphi %s1113_s27, %s1341_s27   ;;  %s1053_s26 = sphi %s1111_s26, %s1340_s26   ;;  %s1049_s25 = sphi %s1109_s25, %s1339_s25   ;;  %s1045_s24 = sphi %s1107_s24, %s1338_s24  }
   0x6   : > { %s1132_s30 = sadd.s32 1, %s1057_s27   ;;  %s181_s8 = sadd.s32 1, %s1053_s26 }
   0x7   : > { %s178_s9 = ssub.s32 %s1057_s27, %s1132_s30  ;;  %p191_p0 = scmp.ne.s32.totalorder %s1053_s26, %s1049_s25 }
   0x8   : > { %p179_p1 = scmp.eq.s32.totalorder %s178_s9, 0  ;;  %p192_p2 = scmp.eq.s32.totalorder %s1128_s28, 3 }
   0x9   : > { %p197_p3 = scmp.ne.s32.totalorder %s1049_s25, %s1045_s24  ;;  %p198_p4 = scmp.eq.s32.totalorder %s678_s29, 3 }
   0xa   : > { %s1143_s10 = scalar_select %p179_p1, %s1053_s26, %s181_s8  }
   0xb   : > { %p1145_p5 = por %p192_p2, %p191_p0  ;;  %p1149_p6 = por %p198_p4, %p197_p3 }
   0xc   : > { %1325 = sst [smem:[#allocation11_spill]] %s1143_s10  ;;  %p679_p7 = scmp.ge.s32.totalorder %s1057_s27, 1 }
   0xd   : > { %s1326_s11 = scalar_select %p1145_p5, 1, 0 }
   0xe   : > { %s1327_s12 = scalar_select %p1149_p6, 1, 0 }
   0xf   : > { %p205_p8 = scmp.lt.s32.totalorder %s1057_s27, 5  ;;  %p1322_p9 = scmp.eq.s32.totalorder %s1128_s28, 0 }
  0x10   : > { %s1059_s14 = smov [#allocation2]   ;;  %s1060_s17 = smov [#allocation5]  }
  0x11   : > { %p1156_p10 = pnand %p679_p7, %p205_p8  ;;  %s223_s15 = sshll.u32 %s1059_s14, 4  ;;  %s224_s15 = int_to_ptr.vmem [resolvable:$true] %s223_s15 }
  0x12   : > { %s239_s18 = sshll.u32 %s1060_s17, 4  ;;  %s931_s21 = scalar_lea.hbm %s1317_s3, 2048  ;;  %s1168_s18 = int_to_ptr.vmem [resolvable:$true] %s239_s18 }
  0x13   : > { %s1328_s13 = scalar_select %p1156_p10, 1, 0 }
  0x14   : > { %p872_p11 = pneg %p1156_p10  ;;  %p932_p13 = scmp.ne.s32.totalorder %s1317_s3, %s931_s21 }
  0x15   : > { %p938_p3 = scmp.lt.u32.totalorder %s931_s21, %s1317_s3 }
  0x16   : > { %p1164_p12 = pnand %p1322_p9, %p872_p11 }
  0x18   : > { %p933_p0 = pneg %p1164_p12 }
  0x1a   : > { %p934_p1 = pnand %p933_p0, %p932_p13 }
  0x1c   : > { %p935_p2 = pneg %p934_p1 }
  0x1e   : > { %p940_p4 = pnand %p938_p3, %p935_p2 }
  0x20   : > { %943 = shalt.err (!%p940_p4)
}
  0x21   : > { %s944_s9 = scalar_lea.vmem %s224_s15, 2048  ;;  %p952_p9 = scmp.lt.s32.totalorder %s224_s15, %s224_s15 }
  0x22   : > { %p945_p7 = scmp.ne.s32.totalorder %s224_s15, %s944_s9  ;;  %p953_p6 = scmp.lt.s32.totalorder %s944_s9, %s944_s9 }
  0x24   : > { %p947_p8 = pnand %p945_p7, %p933_p0  ;;  %p954_p5 = por %p953_p6, %p952_p9 }
  0x26   : > { %p948_p11 = pneg %p947_p8 }
  0x28   : > { %p955_p10 = pnand %p954_p5, %p948_p11 }
  0x2a   : > { %958 = shalt.err (!%p955_p10)
}
  0x2b   : > { %s1061_s14 = smov 128   ;;  %s1062_s17 = smov 8  }
  0x2c   : > { %875 = dma.hbm_to_vmem [thread:$0]  (!%p1164_p12), %s1317_s3, 2048, %s224_s15, [#allocation3], %s1061_s14, %s1061_s14, %s1062_s17  }
  0x2d   : > { %s959_s23 = scalar_lea.hbm %s1319_s5, 2048 }
  0x2e   : > { %p960_p13 = scmp.ne.s32.totalorder %s1319_s5, %s959_s23  ;;  %p966_p9 = scmp.lt.u32.totalorder %s959_s23, %s1319_s5 }
  0x30   : > { %p962_p5 = pnand %p960_p13, %p933_p0 }
  0x32   : > { %p963_p6 = pneg %p962_p5 }
  0x34   : > { %p968_p10 = pnand %p966_p9, %p963_p6 }
  0x36   : > { %971 = shalt.err (!%p968_p10)
}
  0x37   : > { %s972_s15 = scalar_lea.vmem %s1168_s18, 2048  ;;  %p980_p4 = scmp.lt.s32.totalorder %s1168_s18, %s1168_s18 }
  0x38   : > { %p973_p1 = scmp.ne.s32.totalorder %s1168_s18, %s972_s15  ;;  %p981_p7 = scmp.lt.s32.totalorder %s972_s15, %s972_s15 }
  0x3a   : > { %p975_p2 = pnand %p973_p1, %p933_p0  ;;  %p982_p8 = por %p981_p7, %p980_p4 }
  0x3c   : > { %p976_p3 = pneg %p975_p2 }
  0x3e   : > { %p983_p11 = pnand %p982_p8, %p976_p3 }
  0x40   : > { %986 = shalt.err (!%p983_p11)
}
  0x41   : > { %878 = dma.hbm_to_vmem [thread:$0]  (!%p1164_p12), %s1319_s5, 2048, %s1168_s18, [#allocation6], %s1061_s14, %s1061_s14, %s1062_s17  }
  0x42   : > { %p1330_p13 = scmp.ne.s32.totalorder %s1328_s13, 0 }
  0x43   : > { %p1331_p5 = scmp.eq.s32.totalorder (!%p1330_p13), %s1128_s28, 0 }
  0x44   : > { %265 = sbr.rel (%p1330_p13) target bundleno = 773 (0x305), region = 48 }
  0x4b   : > { %1032 = dma.done.wait (%p1331_p5), [#allocation3], 2048   ;;  %p1332_p0 = pmov %p1331_p5 }
  0x4d   : > { %1034 = vsyncadd (%p1332_p0), [#allocation3], 4294965248  ;;  %p1333_p6 = pmov %p1332_p0 }
  0x4e   : > { %p1334_p9 = pmov %p1332_p0 }
  0x4f   : > { %1036 = dma.done.wait (%p1333_p6), [#allocation6], 2048  }
  0x50   : > { %1038 = vsyncadd (%p1334_p9), [#allocation6], 4294965248  ;;  %p300_p10 = scmp.lt.s32.totalorder %s1128_s28, 3  ;;  %v1063_v0 = vmov 0.0|0.0   ;;  %vm1064_vm0 = vmmov 0   ;;  %v1065_v1 = vmov 0.0  }
  0x51   : > { %811 = vmatprep.subr.bf16.mxu0 %v1063_v0  ;;  %738 = vmatprep.mubr.msk.f32.mxu0 %vm1064_vm0, %v1065_v1  ;;  %v305_v2 = vld [vmem:[%s1315_s1] sm:$0xff]  ;;  %v306_v3 = vld [vmem:[%s1315_s1 + $0x8] sm:$0xff]  ;;  %v391_v7 = vld [vmem:[#allocation2 + $0x10] sm:$0xff]  ;;  %vm314_vm1 = vcmask 130048   ;;  %s694_s18 = sshll.u32 %s1128_s28, 7  ;;  %p1335_p1 = scmp.ne.s32.totalorder %s1326_s11, 0 }
  0x52   : > { %s301_s13 = scalar_select %p300_p10, %s1128_s28, 3  ;;  %814 = vmatprep.subr.bf16.mxu1 %v1063_v0  ;;  %773 = vmatprep.mubr.msk.f32.mxu1 %vm1064_vm0, %v1065_v1  ;;  %v812_v4 = vpack.c.bf16 %v306_v3, %v305_v2  ;;  %v389_v5 = vld [vmem:[#allocation2] sm:$0xff]  ;;  %v390_v6 = vld [vmem:[#allocation2 + $0x8] sm:$0xff]  ;;  %v392_v9 = vld [vmem:[#allocation2 + $0x18] sm:$0xff] }
  0x53   : > { %v815_v8 = vpack.c.bf16 %v390_v6, %v389_v5  ;;  %v818_v11 = vpack.c.bf16 %v392_v9, %v391_v7  ;;  %v393_v12 = vld [vmem:[#allocation2 + $0x20] sm:$0xff]  ;;  %v394_v13 = vld [vmem:[#allocation2 + $0x28] sm:$0xff]  ;;  %v395_v15 = vld [vmem:[#allocation2 + $0x30] sm:$0xff]  ;;  %s1272_s22 = scalar_lea.hbm %s1321_s7, %s694_s18  ;;  %s1066_s28 = smov [#allocation7]  }
  0x54   : > { %s687_s16 = sshll.u32 %s301_s13, 3  ;;  %813 = vmatpush3.bf16.msra.mxu0 %v812_v4  ;;  %v821_v14 = vpack.c.bf16 %v394_v13, %v393_v12  ;;  %v396_v16 = vld [vmem:[#allocation2 + $0x38] sm:$0xff]  ;;  %v397_v18 = vld [vmem:[#allocation2 + $0x40] sm:$0xff]  ;;  %v398_v19 = vld [vmem:[#allocation2 + $0x48] sm:$0xff]  ;;  %s297_s13 = sand.u32 1, %s1049_s25  }
  0x55   : > { %s303_s23 = scalar_lea.vmem %s1314_s0, %s687_s16  ;;  %816 = vmatpush3.bf16.msra.mxu1 %v815_v8  ;;  %838 = vmatprep.subr.bf16.mxu0 %v1063_v0  ;;  %v824_v17 = vpack.c.bf16 %v396_v16, %v395_v15  ;;  %v827_v20 = vpack.c.bf16 %v398_v19, %v397_v18  ;;  %v399_v21 = vld [vmem:[#allocation2 + $0x50] sm:$0xff]  ;;  %v400_v22 = vld [vmem:[#allocation2 + $0x58] sm:$0xff]  ;;  %v401_v24 = vld [vmem:[#allocation2 + $0x60] sm:$0xff]  ;;  %s686_s16 = sshll.u32 %s297_s13, 3 }
  0x56   : > { %v304_v10 = vld [vmem:[%s303_s23] sm:$0xff]  ;;  %817 = vmatprep.subr.bf16.mxu1 %v1063_v0  ;;  %v830_v23 = vpack.c.bf16 %v400_v22, %v399_v21  ;;  %v402_v25 = vld [vmem:[#allocation2 + $0x68] sm:$0xff]  ;;  %v403_v27 = vld [vmem:[#allocation2 + $0x70] sm:$0xff]  ;;  %s299_s14 = scalar_lea.vmem [#allocation7], %s686_s16  ;;  %s584_s23 = scalar_lea.sflag [#allocation4], %s297_s13 }
  0x57   : > { %739 = vmatmul.mubr.msk.f32.vlgmr.msra.gmra.mrb[0].mxu0 %vm314_vm1, %v304_v10  ;;  %v833_v26 = vpack.c.bf16 %v402_v25, %v401_v24  ;;  %v404_v28 = vld [vmem:[#allocation2 + $0x78] sm:$0xff]  ;;  %v483_v30 = vld [vmem:[#allocation5] sm:$0xff]  ;;  %v484_v31 = vld [vmem:[#allocation5 + $0x8] sm:$0xff]  ;;  %s597_s17 = sshll.u32 %s299_s14, 4  ;;  %s991_s8 = sshll.u32 %s1066_s28, 4  ;;  %s1274_s17 = int_to_ptr.vmem [resolvable:$true] %s597_s17  ;;  %s992_s8 = int_to_ptr.vmem [resolvable:$false] %s991_s8 }
  0x58   : > { %808 = vmatprep.mubr.msk.f32.mxu0 %vm1064_vm0, %v1065_v1  ;;  %v836_v29 = vpack.c.bf16 %v404_v28, %v403_v27  ;;  %v485_v32 = vld [vmem:[#allocation5 + $0x10] sm:$0xff]  ;;  %v839_v33 = vpack.c.bf16 %v484_v31, %v483_v30  ;;  %v486_v34 = vld [vmem:[#allocation5 + $0x18] sm:$0xff]  ;;  %v487_v36 = vld [vmem:[#allocation5 + $0x20] sm:$0xff]  ;;  %s987_s29 = scalar_lea.vmem %s1274_s17, 128  ;;  %s993_s9 = scalar_lea.vmem %s992_s8, 256 }
  0x59   : > { %819 = vmatpush3.bf16.msra.mxu1 %v818_v11  ;;  %v842_v35 = vpack.c.bf16 %v486_v34, %v485_v32  ;;  %v488_v37 = vld [vmem:[#allocation5 + $0x28] sm:$0xff]  ;;  %v489_v39 = vld [vmem:[#allocation5 + $0x30] sm:$0xff]  ;;  %v490_v40 = vld [vmem:[#allocation5 + $0x38] sm:$0xff]  ;;  %p988_p12 = scmp.ne.s32.totalorder %s1274_s17, %s987_s29  ;;  %p994_p4 = scmp.lt.s32.totalorder %s1274_s17, %s992_s8 }
  0x5a   : > { %820 = vmatprep.subr.bf16.mxu1 %v1063_v0  ;;  %840 = vmatpush3.bf16.msra.mxu0 %v839_v33  ;;  %v845_v38 = vpack.c.bf16 %v488_v37, %v487_v36  ;;  %v848_v41 = vpack.c.bf16 %v490_v40, %v489_v39  ;;  %v491_v42 = vld [vmem:[#allocation5 + $0x40] sm:$0xff]  ;;  %v492_v43 = vld [vmem:[#allocation5 + $0x48] sm:$0xff]  ;;  %v493_v45 = vld [vmem:[#allocation5 + $0x50] sm:$0xff]  ;;  %p995_p7 = scmp.lt.s32.totalorder %s993_s9, %s987_s29 }
  0x5b   : > { %841 = vmatprep.subr.bf16.mxu0 %v1063_v0  ;;  %v851_v44 = vpack.c.bf16 %v492_v43, %v491_v42  ;;  %v494_v46 = vld [vmem:[#allocation5 + $0x58] sm:$0xff]  ;;  %v495_v48 = vld [vmem:[#allocation5 + $0x60] sm:$0xff]  ;;  %v496_v49 = vld [vmem:[#allocation5 + $0x68] sm:$0xff]  ;;  %p989_p2 = pnand %p988_p12, %p1335_p1 }
  0x5c   : > { %v854_v47 = vpack.c.bf16 %v494_v46, %v493_v45  ;;  %v857_v50 = vpack.c.bf16 %v496_v49, %v495_v48  ;;  %v688_v51 = vld [vmem:[%s1316_s2] ss:$0 sm:$0xff]  ;;  %v497_v56 = vld [vmem:[#allocation5 + $0x70] sm:$0xff]  ;;  %v498_v57 = vld [vmem:[#allocation5 + $0x78] sm:$0xff]  ;;  %p996_p8 = por %p995_p7, %p994_p4 }
  0x5d   : > { %822 = vmatpush3.bf16.msra.mxu1 %v821_v14  ;;  %v860_v58 = vpack.c.bf16 %v498_v57, %v497_v56  ;;  %v690_v59 = vld [vmem:[%s1318_s4] ss:$0 sm:$0xff]  ;;  %p990_p3 = pneg %p989_p2 }
  0x5e   : > { %823 = vmatprep.subr.bf16.mxu1 %v1063_v0  ;;  %843 = vmatpush3.bf16.msra.mxu0 %v842_v35 }
  0x5f   : > { %844 = vmatprep.subr.bf16.mxu0 %v1063_v0  ;;  %p997_p11 = pnand %p996_p8, %p990_p3 }
  0x61   : > { %825 = vmatpush3.bf16.msra.mxu1 %v824_v17 }
  0x62   : > { %826 = vmatprep.subr.bf16.mxu1 %v1063_v0  ;;  %846 = vmatpush3.bf16.msra.mxu0 %v845_v38 }
  0x63   : > { %847 = vmatprep.subr.bf16.mxu0 %v1063_v0 }
  0x65   : > { %828 = vmatpush3.bf16.msra.mxu1 %v827_v20 }
  0x66   : > { %829 = vmatprep.subr.bf16.mxu1 %v1063_v0  ;;  %849 = vmatpush3.bf16.msra.mxu0 %v848_v41 }
  0x67   : > { %850 = vmatprep.subr.bf16.mxu0 %v1063_v0 }
  0x69   : > { %831 = vmatpush3.bf16.msra.mxu1 %v830_v23 }
  0x6a   : > { %832 = vmatprep.subr.bf16.mxu1 %v1063_v0  ;;  %852 = vmatpush3.bf16.msra.mxu0 %v851_v44 }
  0x6b   : > { %853 = vmatprep.subr.bf16.mxu0 %v1063_v0 }
  0x6d   : > { %834 = vmatpush3.bf16.msra.mxu1 %v833_v26 }
  0x6e   : > { %835 = vmatprep.subr.bf16.mxu1 %v1063_v0  ;;  %855 = vmatpush3.bf16.msra.mxu0 %v854_v47 }
  0x6f   : > { %856 = vmatprep.subr.bf16.mxu0 %v1063_v0 }
  0x71   : > { %837 = vmatpush3.bf16.msra.mxu1 %v836_v29 }
  0x72   : > { %858 = vmatpush3.bf16.msra.mxu0 %v857_v50 }
  0x73   : > { %859 = vmatprep.subr.bf16.mxu0 %v1063_v0  ;;  %v691_v0 = vld [vmem:[%s1320_s6] ss:$0 sm:$0xff] }
  0x76   : > { %861 = vmatpush3.bf16.msra.mxu0 %v860_v58 }
 0x12a   : > { %v384_v52 = vpop.f32.mrb[0].mxu0 }
 0x12b   : > { %v385_v53 = vadd.f32 %v688_v51, %v384_v52  ;;  %v740_v54 = vpop.f32.mrb[1].mxu0 }
 0x12d   : > { %v388_v55 = vmax.f32 %v385_v53, 0.0 }
 0x12f   : > { %774 = vmatmul.mubr.f32.vlgmr.msra.gmra.mrb[0].mxu1 %v388_v55 }
 0x202   : > { %v478_v60 = vpop.f32.mrb[0].mxu1 }
 0x203   : > { %v479_v61 = vadd.f32 %v690_v59, %v478_v60  ;;  %v775_v62 = vpop.f32.mrb[1].mxu1 }
 0x205   : > { %v482_v63 = vmax.f32 %v479_v61, 0.0 }
 0x207   : > { %809 = vmatmul.mubr.f32.vlgmr.msra.gmra.mrb[2].mxu0 %v482_v63 }
 0x2da   : > { %v572_v1 = vpop.f32.mrb[2].mxu0 }
 0x2db   : > { %v573_v2 = vadd.f32 %v691_v0, %v572_v1  ;;  %v810_v3 = vpop.f32.mrb[3].mxu0 }
 0x2dd   : > { %v692_v4 = vmul.f32 -1.442695, %v573_v2 }
 0x2df   : > { %927 = vpow2.f32 %v692_v4 }
 0x2e9   : > { %v928_v5 = vpop.eup %927 }
 0x2ea   : > { %v579_v6 = vadd.f32 1.0, %v928_v5 }
 0x2ec   : > { %929 = vrcp.f32 %v579_v6 }
 0x2f6   : > { %v930_v7 = vpop.eup %929 }
 0x2f7   : > { %582 = vst [vmem:[%s299_s14] sm:$0xff] %v930_v7 }
 0x2f8   : > { %1000 = shalt.err (!%p997_p11)
}
 0x2f9   : > { %s1001_s15 = scalar_lea.hbm %s1272_s22, 128  ;;  %s1005_s13 = scalar_lea.hbm %s1321_s7, 512 }
 0x2fa   : > { %p1002_p13 = scmp.ne.s32.totalorder %s1272_s22, %s1001_s15  ;;  %p1006_p6 = scmp.lt.u32.totalorder %s1272_s22, %s1321_s7 }
 0x2fb   : > { %p1007_p9 = scmp.lt.u32.totalorder %s1005_s13, %s1001_s15  ;;  %p1009_p12 = scmp.lt.u32.totalorder %s1001_s15, %s1272_s22 }
 0x2fc   : > { %p1003_p5 = pnand %p1002_p13, %p1335_p1 }
 0x2fd   : > { %p1008_p10 = por %p1007_p9, %p1006_p6 }
 0x2fe   : > { %p1004_p0 = pneg %p1003_p5 }
 0x2ff   : > { %p1010_p2 = por %p1009_p12, %p1008_p10 }
 0x301   : > { %p1011_p3 = pnand %p1010_p2, %p1004_p0 }
 0x303   : > { %1014 = shalt.err (!%p1011_p3)
}
 0x304   : > { %870 = dma.vmem_to_hbm [thread:$0]  (%p1335_p1), %s1274_s17, 128, %s1272_s22, %s584_s23  }
 0x305 PF: > { %p887_p4 = scmp.ge.s32.totalorder %s1057_s27, 2  ;;  %s609_s14 = sand.u32 1, %s1045_s24  }
 0x306   : > { %p1336_p7 = scmp.ne.s32.totalorder %s1327_s12, 0  ;;  %s610_s20 = scalar_lea.sflag [#allocation4], %s609_s14 }
 0x308   : > { %p880_p8 = pnand %p887_p4, %p1336_p7 }
 0x30a   : > { %1040 = dma.done.wait (!%p880_p8), %s610_s20, 128  }
 0x30b   : > { %1042 = vsyncadd (!%p880_p8), %s610_s20, 4294967168  ;;  %s1337_s21 = sld [smem:[#allocation11_spill]]  ;;  %p19_p11 = scmp.ge.s32.totalorder %s1132_s30, 6  }
 0x30c   : > { %s1338_s24 = smov %s1049_s25  ;;  %s1339_s25 = smov %s1053_s26 }
 0x30d   : > { %s1341_s27 = smov %s1132_s30  ;;  %21 = sbr.rel (!%p19_p11) target bundleno = 5 (0x5), region = 92 }
 0x311   : > { %s1340_s26 = smov %s1337_s21 }
 0x314   :  { %615 = vsyncpa [#allocation3], 1 }
 0x315   :  { %617 = vsyncpa [#allocation3 + $0x1], 1 }
 0x316   :  { %618 = vsyncpa [#allocation6], 1 }
 0x317   :  { %619 = vsyncpa [#allocation4], 1 }
 0x318   :  { %621 = vsyncpa [#allocation4 + $0x1], 1 }

</bundles_post_ra>
